<compile_context>
chip_gen: v5e
topology: v5e:2x2
jax: 0.10.0
libtpu: 0.0.40
codegen_flags: <defaults>
</compile_context>

<pallas_src>
import jax
import jax.numpy as jnp
from jax.experimental import pallas as pl
from jax.experimental.pallas import tpu as pltpu

_LANE = 128


def _round_up(v, m):
    return -(-v // m) * m


def _round_down(v, m):
    return (v // m) * m


def _physical_vmem_bytes():
    try:
        return int(pltpu.get_tpu_info().vmem_capacity_bytes)
    except Exception:
        return 64 * 1024 * 1024      # v7x lower bound; safe everywhere


def _fusion_kernel(x_ref, y_ref, wx_ref, wy_ref, shift_ref, o_ref):
    # Blocks (channel-major, spatial positions on lanes):
    #   x_ref, y_ref, o_ref : (C, T)   activation dtype (f32 or bf16)
    #   wx_ref, wy_ref      : (C, C)   BN-scale folded into weights
    #   shift_ref           : (C, 1)   f32 folded conv-bias + BN shift
    x = x_ref[...]
    y = y_ref[...]

    # 1x1 conv over cat([x, y], channel) == two matmuls summed (f32 MXU acc).
    # TODO(synk): if profiling on v6e shows this tiny-C dot on the per-step
    # critical path (it is normally hidden under DMA), replace with an
    # unrolled VPU broadcast-FMA over C.
    z = jnp.dot(wx_ref[...], x, preferred_element_type=jnp.float32)
    z = z + jnp.dot(wy_ref[...], y, preferred_element_type=jnp.float32)

    # Folded conv-bias + BatchNorm(eval) shift, then ReLU (f32 on the VPU).
    feat = jnp.maximum(z + shift_ref[...], 0.0)

    # Residual fusion: x + feature + y (always f32 on the VPU).
    o_ref[...] = (x.astype(jnp.float32) + feat + y.astype(jnp.float32)
                  ).astype(o_ref.dtype)


def fusion_module_insmfe(x, y, params, *, act_block_bytes=2 << 20):
    """Fusion_Module_InSMFE forward.

    x, y: NCHW (N, C, H, W), float32 or bfloat16 (bf16 halves HBM traffic on
    this memory-bound op; residual math is still done in f32 in-kernel).
    """
    N, C, H, W = x.shape
    assert y.shape == x.shape and y.dtype == x.dtype
    HW = H * W
    act_dtype = x.dtype
    eps = 1e-5

    conv_w = params["conv_w"]        # (C, 2C, 1, 1)  PyTorch layout
    conv_b = params["conv_b"]        # (C,)
    gamma = params["bn_gamma"]       # (C,)
    beta = params["bn_beta"]         # (C,)
    mean = params["bn_mean"]         # (C,)
    var = params["bn_var"]           # (C,)

    # Fold eval-mode BN into the conv:
    #   BN(W@z + b) = (scale*W) @ z + (scale*(b - mean) + beta)
    scale = gamma / jnp.sqrt(var + eps)                       # (C,) f32
    w_full = conv_w[:, :, 0, 0]                               # (C_out, 2C_in)
    wx = (scale[:, None] * w_full[:, :C]).astype(act_dtype)   # (C, C)
    wy = (scale[:, None] * w_full[:, C:]).astype(act_dtype)   # (C, C)
    shift2d = (scale * (conv_b - mean) + beta).astype(jnp.float32).reshape(C, 1)

    # Free reshapes (no data movement): NCHW -> (N, C, HW).
    xr = x.reshape(N, C, HW)
    yr = y.reshape(N, C, HW)

    # ---- VMEM accounting (with sublane/lane padding) ----------------------
    act_itemsize = jnp.dtype(act_dtype).itemsize
    sublanes = 8 * (4 // act_itemsize)            # f32: 8, bf16: 16
    c_pad = _round_up(C, sublanes)

    w_block_bytes = _round_up(C, sublanes) * _round_up(C, _LANE) * act_itemsize
    shift_block_bytes = _round_up(C, 8) * _LANE * 4
    # Constant blocks (index_map is constant): single-buffer them only when
    # they are big enough to matter (keeps the large activation tile on v7x).
    single_buffer_consts = C >= 256
    const_bufs = 1 if single_buffer_consts else 2
    const_bytes = const_bufs * (2 * w_block_bytes + shift_block_bytes)

    phys_vmem = _physical_vmem_bytes()            # 128 MiB v5e/v6e, 64 MiB v7x
    vmem_cap = min(phys_vmem * 3 // 4, 96 * 1024 * 1024)
    headroom = 2 * 1024 * 1024

    # ---- Spatial tile: byte budget + VMEM cap, 128-lane granular -----------
    per_lane_bytes = c_pad * act_itemsize         # bytes per spatial column
    budget_tile = _round_down(
        max(act_block_bytes, _LANE * per_lane_bytes) // per_lane_bytes, _LANE)
    vmem_for_acts = max(vmem_cap - const_bytes - headroom,
                        6 * _LANE * per_lane_bytes)
    vmem_tile = _round_down(vmem_for_acts // (6 * per_lane_bytes), _LANE)
    tile = max(min(budget_tile, vmem_tile), _LANE)
    if tile >= HW:
        tile = HW                                  # full row (any HW) is legal
    # v7x: keep both TensorCores busy when batch == 1 (>= 2 parallel blocks).
    if N == 1 and HW > _LANE and pl.cdiv(HW, tile) < 2:
        tile = _round_up(pl.cdiv(HW, 2), _LANE)

    grid = (N, pl.cdiv(HW, tile))

    # Always pass an explicit VMEM limit derived from the real footprint
    # (double-buffered x/y/out activation blocks + constant blocks), never
    # assuming a particular generation's default scoped limit.
    act_buf_bytes = c_pad * _round_up(tile, _LANE) * act_itemsize
    vmem_need = 2 * 3 * act_buf_bytes + const_bytes
    vmem_limit = int(min(vmem_cap,
                         max(vmem_need + vmem_need // 4 + headroom,
                             32 * 1024 * 1024)))

    # ---- BlockSpecs ---------------------------------------------------------
    act_spec = pl.BlockSpec((None, C, tile), lambda n, j: (n, 0, j))
    if single_buffer_consts:
        w_spec = pl.BlockSpec((C, C), lambda n, j: (0, 0),
                              pipeline_mode=pl.Buffered(1))
        vec_spec = pl.BlockSpec((C, 1), lambda n, j: (0, 0),
                                pipeline_mode=pl.Buffered(1))
    else:
        w_spec = pl.BlockSpec((C, C), lambda n, j: (0, 0))
        vec_spec = pl.BlockSpec((C, 1), lambda n, j: (0, 0))

    out = pl.pallas_call(
        _fusion_kernel,
        out_shape=jax.ShapeDtypeStruct((N, C, HW), act_dtype),
        grid_spec=pltpu.PrefetchScalarGridSpec(
            num_scalar_prefetch=0,
            grid=grid,
            in_specs=[act_spec, act_spec, w_spec, w_spec, vec_spec],
            out_specs=act_spec,
        ),
        compiler_params=pltpu.CompilerParams(
            dimension_semantics=("parallel", "parallel"),
            vmem_limit_bytes=vmem_limit,
        ),
    )(xr, yr, wx, wy, shift2d)

    # Free reshape back to NCHW.
    return out.reshape(N, C, H, W)


def init_params(key, channel):
    """Deterministic parameter init matching the module's shapes."""
    k1, k2, k3, k4, k5, k6 = jax.random.split(key, 6)
    c_in = 2 * channel
    # Conv2d(2C, C, kernel_size=1) weight/bias (PyTorch layout).
    conv_w = jax.random.normal(k1, (channel, c_in, 1, 1), jnp.float32) * 0.1
    conv_b = jax.random.normal(k2, (channel,), jnp.float32) * 0.1
    # BatchNorm2d(C) parameters and running stats (eval-mode semantics).
    bn_gamma = 1.0 + 0.05 * jax.random.normal(k3, (channel,), jnp.float32)
    bn_beta = 0.05 * jax.random.normal(k4, (channel,), jnp.float32)
    bn_mean = 0.05 * jax.random.normal(k5, (channel,), jnp.float32)
    bn_var = 1.0 + 0.05 * jax.random.uniform(k6, (channel,), jnp.float32)
    return dict(conv_w=conv_w, conv_b=conv_b, bn_gamma=bn_gamma,
                bn_beta=bn_beta, bn_mean=bn_mean, bn_var=bn_var)


def reference_jax(x, y, params):
    """Pure-JAX reference of the PyTorch forward (eval-mode BN)."""
    eps = 1e-5
    cat = jnp.concatenate([x, y], axis=1)                       # (N, 2C, H, W)
    w = params["conv_w"][:, :, 0, 0]                            # (C, 2C)
    z = jnp.einsum("nchw,oc->nohw", cat, w) + params["conv_b"][None, :, None, None]
    scale = params["bn_gamma"] / jnp.sqrt(params["bn_var"] + eps)
    z = (z - params["bn_mean"][None, :, None, None]) * scale[None, :, None, None] \
        + params["bn_beta"][None, :, None, None]
    feat = jnp.maximum(z, 0.0)
    return x + feat + y


if __name__ == "__main__":
    key = jax.random.PRNGKey(0)
    kx, ky, kp = jax.random.split(key, 3)

    N, C, H, W = 2, 4, 16, 16
    x = jax.random.normal(kx, (N, C, H, W), jnp.float32)
    y = jax.random.normal(ky, (N, C, H, W), jnp.float32)
    params = init_params(kp, C)

    # --- f32 activations: tight comparison vs reference --------------------
    ref = jax.block_until_ready(reference_jax(x, y, params))
    out = jax.block_until_ready(fusion_module_insmfe(x, y, params))
    assert out.shape == (N, C, H, W) and out.dtype == x.dtype
    assert jnp.allclose(out, ref, atol=1e-4, rtol=1e-4), "f32 mismatch vs reference"

    # --- bf16 activations end-to-end (halves HBM traffic on memory-bound op)
    xb = x.astype(jnp.bfloat16)
    yb = y.astype(jnp.bfloat16)
    out_b = jax.block_until_ready(fusion_module_insmfe(xb, yb, params))
    ref_b = reference_jax(xb.astype(jnp.float32), yb.astype(jnp.float32), params)
    assert out_b.dtype == jnp.bfloat16
    assert jnp.allclose(out_b.astype(jnp.float32), ref_b, atol=1e-1, rtol=5e-2), \
        "bf16 mismatch vs reference"

    # --- single image: exercises the >=2-block spatial split (v7x, 2 TCs) ---
    out1 = jax.block_until_ready(fusion_module_insmfe(x[:1], y[:1], params))
    ref1 = reference_jax(x[:1], y[:1], params)
    assert jnp.allclose(out1, ref1, atol=1e-4, rtol=1e-4), "N=1 mismatch vs reference"

    print("KERNEL_OK")
</pallas_src>

<mosaic_0001>
module attributes {stable_mosaic.version = 11 : i64} {
  func.func @_fusion_kernel(%arg0: i32, %arg1: i32, %arg2: memref<1x4x256xf32, #tpu.memory_space<vmem>>, %arg3: memref<1x4x256xf32, #tpu.memory_space<vmem>>, %arg4: memref<4x4xf32, #tpu.memory_space<vmem>>, %arg5: memref<4x4xf32, #tpu.memory_space<vmem>>, %arg6: memref<4x1xf32, #tpu.memory_space<vmem>>, %arg7: memref<1x4x256xf32, #tpu.memory_space<vmem>>) attributes {dimension_semantics = [#tpu.dimension_semantics<parallel>, #tpu.dimension_semantics<parallel>], iteration_bounds = array<i64: 2, 1>, scalar_prefetch = 0 : i64, scratch_operands = 0 : i64, tpu.core_type = #tpu.core_type<tc>, window_params = [{transform_indices = @transform_0, window_bounds = array<i64: 1, 4, 256>}, {transform_indices = @transform_1, window_bounds = array<i64: 1, 4, 256>}, {pipeline_mode = #tpu.pipeline_mode<synchronous>, transform_indices = @transform_2, window_bounds = array<i64: 4, 4>}, {pipeline_mode = #tpu.pipeline_mode<synchronous>, transform_indices = @transform_3, window_bounds = array<i64: 4, 4>}, {pipeline_mode = #tpu.pipeline_mode<synchronous>, transform_indices = @transform_4, window_bounds = array<i64: 4, 1>}, {transform_indices = @transform_5, window_bounds = array<i64: 1, 4, 256>}]} {
    %c0 = arith.constant 0 : index
    %c0_0 = arith.constant 0 : index
    %c0_1 = arith.constant 0 : index
    %0 = vector.load %arg2[%c0, %c0_0, %c0_1] : memref<1x4x256xf32, #tpu.memory_space<vmem>>, vector<1x4x256xf32>
    %1 = vector.shape_cast %0 : vector<1x4x256xf32> to vector<4x256xf32>
    %c0_2 = arith.constant 0 : index
    %c0_3 = arith.constant 0 : index
    %c0_4 = arith.constant 0 : index
    %2 = vector.load %arg3[%c0_2, %c0_3, %c0_4] : memref<1x4x256xf32, #tpu.memory_space<vmem>>, vector<1x4x256xf32>
    %3 = vector.shape_cast %2 : vector<1x4x256xf32> to vector<4x256xf32>
    %c0_5 = arith.constant 0 : index
    %c0_6 = arith.constant 0 : index
    %4 = vector.load %arg4[%c0_5, %c0_6] : memref<4x4xf32, #tpu.memory_space<vmem>>, vector<4x4xf32>
    %cst = arith.constant dense<0.000000e+00> : vector<4x256xf32>
    %5 = tpu.matmul %4, %1, %cst {dimension_numbers = #tpu.dot_dimension_numbers<[1], [0], [0], [1], [0, 0, 1, 1], [], []>} : vector<4x4xf32>, vector<4x256xf32>, vector<4x256xf32> -> vector<4x256xf32>
    %c0_7 = arith.constant 0 : index
    %c0_8 = arith.constant 0 : index
    %6 = vector.load %arg5[%c0_7, %c0_8] : memref<4x4xf32, #tpu.memory_space<vmem>>, vector<4x4xf32>
    %cst_9 = arith.constant dense<0.000000e+00> : vector<4x256xf32>
    %7 = tpu.matmul %6, %3, %cst_9 {dimension_numbers = #tpu.dot_dimension_numbers<[1], [0], [0], [1], [0, 0, 1, 1], [], []>} : vector<4x4xf32>, vector<4x256xf32>, vector<4x256xf32> -> vector<4x256xf32>
    %8 = arith.addf %5, %7 : vector<4x256xf32>
    %c0_10 = arith.constant 0 : index
    %c0_11 = arith.constant 0 : index
    %9 = vector.load %arg6[%c0_10, %c0_11] : memref<4x1xf32, #tpu.memory_space<vmem>>, vector<4x1xf32>
    %10 = vector.broadcast %9 : vector<4x1xf32> to vector<4x256xf32>
    %11 = arith.addf %8, %10 : vector<4x256xf32>
    %cst_12 = arith.constant 0.000000e+00 : f32
    %12 = vector.broadcast %cst_12 : f32 to vector<4x256xf32>
    %13 = arith.maximumf %11, %12 : vector<4x256xf32>
    %14 = arith.addf %1, %13 : vector<4x256xf32>
    %15 = arith.addf %14, %3 : vector<4x256xf32>
    %c0_13 = arith.constant 0 : index
    %c0_14 = arith.constant 0 : index
    %c0_15 = arith.constant 0 : index
    %16 = vector.load %arg7[%c0_13, %c0_14, %c0_15] : memref<1x4x256xf32, #tpu.memory_space<vmem>>, vector<1x4x256xf32>
    %17 = vector.shape_cast %16 : vector<1x4x256xf32> to vector<4x256xf32>
    %18 = vector.shape_cast %15 : vector<4x256xf32> to vector<1x4x256xf32>
    tpu.vector_store %arg7[%c0_13, %c0_14, %c0_15], %18 {strides = array<i32>} : memref<1x4x256xf32, #tpu.memory_space<vmem>>, vector<1x4x256xf32>,
    return
  }
  func.func @transform_0(%arg0: i32, %arg1: i32) -> (i32, i32, i32) {
    %c0_i32 = arith.constant 0 : i32
    %c0_i32_0 = arith.constant 0 : i32
    return %arg0, %c0_i32, %arg1 : i32, i32, i32
  }
  func.func @transform_1(%arg0: i32, %arg1: i32) -> (i32, i32, i32) {
    %c0_i32 = arith.constant 0 : i32
    %c0_i32_0 = arith.constant 0 : i32
    return %arg0, %c0_i32, %arg1 : i32, i32, i32
  }
  func.func @transform_2(%arg0: i32, %arg1: i32) -> (i32, i32) {
    %c0_i32 = arith.constant 0 : i32
    %c0_i32_0 = arith.constant 0 : i32
    %c0_i32_1 = arith.constant 0 : i32
    return %c0_i32, %c0_i32_0 : i32, i32
  }
  func.func @transform_3(%arg0: i32, %arg1: i32) -> (i32, i32) {
    %c0_i32 = arith.constant 0 : i32
    %c0_i32_0 = arith.constant 0 : i32
    %c0_i32_1 = arith.constant 0 : i32
    return %c0_i32, %c0_i32_0 : i32, i32
  }
  func.func @transform_4(%arg0: i32, %arg1: i32) -> (i32, i32) {
    %c0_i32 = arith.constant 0 : i32
    %c0_i32_0 = arith.constant 0 : i32
    %c0_i32_1 = arith.constant 0 : i32
    return %c0_i32, %c0_i32_0 : i32, i32
  }
  func.func @transform_5(%arg0: i32, %arg1: i32) -> (i32, i32, i32) {
    %c0_i32 = arith.constant 0 : i32
    %c0_i32_0 = arith.constant 0 : i32
    return %arg0, %c0_i32, %arg1 : i32, i32, i32
  }
}

</mosaic_0001>

<bundles_post_ra>
// kernel: tpu_custom_call.1
= control target key start
LH: loop header
LB: loop body
LE: loop exit
PB: predicated region body
PF: predicated region fallthrough
CT: control target
= control target key end

     0   :  { %s1082_s0 = inlined_call_operand.hbm [shape: f32[2,4,256], index: 0, kind: input, shape index: {}]   ;;  %s1083_s1 = inlined_call_operand.hbm [shape: f32[2,4,256], index: 1, kind: input, shape index: {}]   ;;  %s1084_s2 = inlined_call_operand.vmem [shape: f32[4,4], index: 2, kind: input, shape index: {}]   ;;  %s1085_s3 = inlined_call_operand.hbm [shape: f32[4,4], index: 3, kind: input, shape index: {}]   ;;  %s1086_s4 = inlined_call_operand.vmem [shape: f32[4,1], index: 4, kind: input, shape index: {}]   ;;  %s1087_s5 = inlined_call_operand.hbm [shape: f32[2,4,256], index: 5, kind: output, shape index: {}]  }
   0x1   :  { %1092 = sst [smem:[#allocation18_spill]] %s1085_s3 }
   0x2   :  { %10 = vsyncpa [#allocation3], 0 }
   0x3   :  { %12 = vsyncpa [#allocation3 + $0x1], 0 }
   0x4   :  { %13 = vsyncpa [#allocation6], 0 }
   0x5   :  { %15 = vsyncpa [#allocation6 + $0x1], 0 }
   0x6   :  { %16 = vsyncpa [#allocation4], 0 }
   0x7   :  { %18 = vsyncpa [#allocation4 + $0x1], 0  ;;  %s912_s18 = smov 0   ;;  %s914_s19 = smov 0  }
   0x8   :  { %s916_s20 = smov 0   ;;  %s918_s21 = smov 0  }
   0x9   :  { %s920_s22 = smov 0   ;;  %s922_s23 = smov 0  }
   0xa LB: > { %1093 = sst [smem:[#allocation13_spill]] %s858_s18  ;;  %s943_s24 = sadd.s32 4294967295, %s878_s23   ;;  %s878_s23 = sphi %s922_s23, %s24_s23   ;;  %s874_s22 = sphi %s920_s22, %s1108_s22   ;;  %s870_s21 = sphi %s918_s21, %s1107_s21   ;;  %s866_s20 = sphi %s916_s20, %s1111_s20   ;;  %s862_s19 = sphi %s914_s19, %s1110_s19   ;;  %s858_s18 = sphi %s912_s18, %s1109_s18  }
   0xb   : > { %1094 = sst [smem:[#allocation14_spill]] %s874_s22  ;;  %s587_s25 = sadd.s32 4294967294, %s878_s23  }
   0xc   : > { %p58_p0 = scmp.ne.s32.totalorder %s862_s19, %s858_s18  ;;  %p59_p1 = scmp.eq.s32.totalorder %s943_s24, 0 }
   0xd   : > { %p175_p2 = scmp.eq.s32.totalorder %s943_s24, 1  ;;  %p181_p3 = scmp.eq.s32.totalorder %s587_s25, 1 }
   0xe   : > { %p952_p4 = por %p59_p1, %p58_p0  ;;  %p588_p5 = scmp.ge.s32.totalorder %s878_s23, 1 }
   0xf   : > { %p957_p6 = por %p181_p3, %p58_p0  ;;  %p188_p7 = scmp.lt.s32.totalorder %s878_s23, 3 }
  0x10   : > { %s1098_s3 = sld [smem:[#allocation18_spill]]  ;;  %p590_p9 = scmp.ge.s32.totalorder %s878_s23, 2 }
  0x11   : > { %s1096_s27 = scalar_select %p957_p6, 1, 0 }
  0x12   : > { %p965_p8 = pnand %p588_p5, %p188_p7  ;;  %s880_s7 = smov [#allocation7]  }
  0x13   : > { %1097 = sst [smem:[#allocation15_spill]] %s1096_s27  ;;  %s205_s8 = sshll.u32 %s880_s7, 4  ;;  %s206_s8 = int_to_ptr.vmem [resolvable:$true] %s205_s8 }
  0x14   : > { %p628_p10 = pneg %p965_p8  ;;  %s36_s9 = sadd.s32 1, %s874_s22 }
  0x15   : > { %p38_p12 = scmp.ge.s32.totalorder %s36_s9, 2  ;;  %s45_s10 = sadd.s32 1, %s866_s20 }
  0x16   : > { %s203_s30 = sshll.u32 %s1098_s3, 4  ;;  %p629_p11 = pnand %p628_p10, %p59_p1  ;;  %s204_s30 = int_to_ptr.hbm [resolvable:$true] %s203_s30 }
  0x17   : > { %p52_p13 = scmp.ne.s32.totalorder %s866_s20, %s862_s19  ;;  %p53_p0 = scmp.eq.s32.totalorder %s878_s23, 0 }
  0x18   : > { %631 = dma.hbm_to_vmem [thread:$0]  (!%p629_p11), %s204_s30, 64, %s206_s8, [#allocation6]  }
  0x19   : > { %s1113_s9 = smov (%p38_p12, %s36_s9), 0  ;;  %p981_p3 = por %p53_p0, %p52_p13 }
  0x1a   : > { %1100 = sst [smem:[#allocation16_spill]] %s1113_s9  ;;  %p987_p5 = por %p175_p2, %p52_p13 }
  0x1b   : > { %s40_s13 = ssub.s32 %s874_s22, %s1113_s9  ;;  %p644_p7 = scmp.lt.s32.totalorder %s878_s23, 2 }
  0x1c   : > { %p43_p10 = scmp.eq.s32.totalorder %s40_s13, 0  ;;  %s219_s14 = sand.u32 1, %s866_s20  }
  0x1d   : > { %s591_s15 = sshll.u32 %s219_s14, 3  ;;  %s615_s17 = sshll.u32 %s874_s22, 3 }
  0x1e   : > { %s996_s16 = scalar_select %p43_p10, %s866_s20, %s45_s10  }
  0x1f   : > { %s230_s29 = scalar_lea.hbm %s1082_s0, %s615_s17  ;;  %s223_s30 = scalar_lea.vmem [#allocation2], %s591_s15 }
  0x20   : > { %1103 = sst [smem:[#allocation17_spill]] %s996_s16  ;;  %s234_s7 = sshll.u32 %s223_s30, 4  ;;  %s235_s7 = int_to_ptr.vmem [resolvable:$true] %s234_s7 }
  0x21   : > { %s232_s8 = sshll.u32 %s230_s29, 4  ;;  %p633_p2 = pnand %p644_p7, %p981_p3  ;;  %s233_s8 = int_to_ptr.hbm [resolvable:$true] %s232_s8 }
  0x22   : > { %s252_s13 = scalar_lea.hbm %s1083_s1, %s615_s17  ;;  %s241_s27 = sand.u32 1, %s878_s23  }
  0x23   : > { %s220_s18 = scalar_lea.sflag [#allocation3], %s219_s14  ;;  %s254_s10 = sshll.u32 %s252_s13, 4  ;;  %s255_s10 = int_to_ptr.hbm [resolvable:$true] %s254_s10 }
  0x24   : > { %635 = dma.hbm_to_vmem [thread:$0]  (!%p633_p2), %s233_s8, 128, %s235_s7, %s220_s18  }
  0x25   : > { %s245_s22 = scalar_lea.vmem [#allocation5], %s591_s15  ;;  %s242_s25 = scalar_lea.sflag [#allocation6], %s241_s27 }
  0x26   : > { %s256_s16 = sshll.u32 %s245_s22, 4  ;;  %265 = sbr.rel (%p965_p8) target bundleno = 215 (0xd7), region = 40  ;;  %s257_s16 = int_to_ptr.vmem [resolvable:$true] %s256_s16 }
  0x27   : > { %638 = dma.hbm_to_vmem [thread:$0]  (!%p633_p2), %s255_s10, 128, %s257_s16, %s242_s25  }
  0x28   : > { %s1011_s11 = sand.u32 (!%p965_p8), 1, %s862_s19  }
  0x29   : > { %s1014_s3 = sshll.u32 (!%p965_p8), %s1011_s11, 3  ;;  %s268_s18 = scalar_lea.sflag (!%p965_p8), [#allocation3], %s1011_s11 }
  0x2a   : > { %s271_s9 = scalar_lea.vmem (!%p965_p8), [#allocation2], %s1014_s3 }
  0x2b   : > { %841 = dma.done.wait (%p952_p4), %s268_s18, 128  }
  0x2c   : > { %843 = vsyncadd (%p952_p4), %s268_s18, 4294967168  ;;  %s277_s22 = sand.u32 1, %s943_s24   ;;  %s281_s6 = scalar_lea.vmem [#allocation5], %s1014_s3 }
  0x2d   : > { %s278_s27 = scalar_lea.sflag [#allocation6], %s277_s22 }
  0x2e   : > { %845 = dma.done.wait (%p952_p4), %s278_s27, 128  }
  0x2f   : > { %847 = vsyncadd (%p952_p4), %s278_s27, 4294967168 }
  0x30   : > { %849 = dma.done.wait (%p59_p1), [#allocation6], 64  }
  0x31   : > { %851 = vsyncadd (%p59_p1), [#allocation6], 4294967232  ;;  %v881_v0 = vmov 0   ;;  %v323_v1 = vld [vmem:[%s281_s6] sm:$0xff]  ;;  %v322_v3 = vld [vmem:[%s271_s9] sm:$0xff]  ;;  %vm334_vm0 = vcmask 1043456  }
  0x32   : > { %697 = vset.pattern.permute.xlu0 %v881_v0  ;;  %327 = vst [vmem:[#allocation1] ss:$2 sm:$0xff] %v323_v1  ;;  %v430_v2 = vld [vmem:[%s1086_s4] sm:$0xf]  ;;  %v325_v4 = vld [vmem:[#allocation7] sm:$0xf] }
  0x33   : > { %433 = vperm.xlu0 %697, %v430_v2   ;;  %vm330_vm1 = vcmask 31744   ;;  %v324_v7 = vld [vmem:[%s1084_s2] sm:$0xf]  ;;  %s617_s16 = sshll.u32 %s870_s21, 3  ;;  %s318_s30 = scalar_lea.vmem [#allocation8], %s1014_s3 }
  0x34   : > { %s462_s29 = scalar_lea.hbm %s1087_s5, %s617_s16  ;;  %s464_s7 = sshll.u32 %s318_s30, 4  ;;  %s465_s7 = int_to_ptr.vmem [resolvable:$true] %s464_s7 }
  0x35   : > { %s466_s8 = sshll.u32 %s462_s29, 4  ;;  %s449_s13 = scalar_lea.sflag [#allocation4], %s1011_s11  ;;  %s467_s8 = int_to_ptr.hbm [resolvable:$true] %s466_s8 }
  0x36   : > { %s802_s21 = sshra.s32 %s467_s8, 4  ;;  %s808_s9 = scalar_lea.hbm %s1087_s5, 16  ;;  %s803_s21 = int_to_ptr.hbm [resolvable:$true] %s802_s21 }
  0x37   : > { %s804_s10 = scalar_lea.hbm %s803_s21, 8  ;;  %p809_p11 = scmp.lt.s32.totalorder %s803_s21, %s1087_s5 }
  0x38   : > { %p805_p1 = scmp.ne.s32.totalorder %s803_s21, %s804_s10  ;;  %p810_p12 = scmp.lt.s32.totalorder %s808_s9, %s804_s10 }
  0x39   : > { %v328_v5 = vld.sshfl [vmem:[#allocation1] sm:$0xff pattern:$0x75316420]  ;;  %v329_v6 = vld.sshfl [vmem:[#allocation1 + $0x8] sm:$0xff pattern:$0x75316420] }
  0x3a   : > { %380 = vst [vmem:[#allocation1] ss:$2 sm:$0xff] %v322_v3  ;;  %602 = vmatpush.msk.msra.mxu0 %vm334_vm0, %v328_v5  ;;  %604 = vmatpush.msk.msra.mxu1 %vm334_vm0, %v329_v6  ;;  %p806_p4 = pnand %p805_p1, %p987_p5  ;;  %p811_p13 = por %p810_p12, %p809_p11 }
  0x3b   : > { %603 = vmatmul.msk.f32.vlgmr.msra.gmra.mxu0 %vm330_vm1, %v325_v4  ;;  %605 = vmatmul.msk.f32.vlgmr.msra.gmra.mxu1 %vm330_vm1, %v325_v4 }
  0x3c   : > { %p807_p8 = pneg %p806_p4 }
  0x3e   : > { %p812_p0 = pnand %p811_p13, %p807_p8 }
  0x41   : > { %v381_v8 = vld.sshfl [vmem:[#allocation1] sm:$0xff pattern:$0x75316420]  ;;  %v382_v9 = vld.sshfl [vmem:[#allocation1 + $0x8] sm:$0xff pattern:$0x75316420] }
  0x42   : > { %606 = vmatpush.msk.msra.mxu2 %vm334_vm0, %v381_v8  ;;  %608 = vmatpush.msk.msra.mxu3 %vm334_vm0, %v382_v9 }
  0x43   : > { %607 = vmatmul.msk.f32.vlgmr.msra.gmra.mxu2 %vm330_vm1, %v324_v7  ;;  %609 = vmatmul.msk.f32.vlgmr.msra.gmra.mxu3 %vm330_vm1, %v324_v7 }
  0xa5   : > { %v434_v12 = vpop.permute.xlu0 %433 }
  0xb8   : > { %v356_v10 = vpop.f32.mrf.mxu0  ;;  %v376_v11 = vpop.f32.mrf.mxu1 }
  0xc6   : > { %v407_v13 = vpop.f32.mrf.mxu2  ;;  %v427_v14 = vpop.f32.mrf.mxu3 }
  0xc7   : > { %v408_v15 = vadd.f32 %v407_v13, %v356_v10  ;;  %v428_v16 = vadd.f32 %v427_v14, %v376_v11 }
  0xc9   : > { %v436_v17 = vadd.f32 %v434_v12, %v408_v15  ;;  %v437_v18 = vadd.f32 %v434_v12, %v428_v16 }
  0xcb   : > { %v439_v19 = vmax.f32 %v437_v18, 0.0  ;;  %v438_v20 = vmax.f32 %v436_v17, 0.0 }
  0xcd   : > { %v442_v21 = vrot.slane %v439_v19, 4 }
  0xcf   : > { %v443_v22 = vsel %vm334_vm0, %v438_v20, %v442_v21 }
  0xd0   : > { %v445_v23 = vadd.f32 %v443_v22, %v322_v3 }
  0xd2   : > { %v446_v24 = vadd.f32 %v445_v23, %v323_v1 }
  0xd4   : > { %447 = vst [vmem:[%s318_s30] sm:$0xff] %v446_v24 }
  0xd5   : > { %815 = shalt.err (!%p812_p0)
}
  0xd6   : > { %626 = dma.vmem_to_hbm [thread:$0]  (%p987_p5), %s465_s7, 128, %s467_s8, %s449_s13  }
  0xd7 PF: > { %s1104_s11 = sld [smem:[#allocation13_spill]]  ;;  %p640_p3 = pnand %p590_p9, %p957_p6 }
  0xd9   : > { %p641_p7 = pneg %p640_p3 }
  0xdd   : > { %s478_s6 = sand.u32 1, %s1104_s11  }
  0xde   : > { %s479_s14 = scalar_lea.sflag [#allocation4], %s478_s6 }
  0xdf   : > { %853 = dma.done.wait (%p641_p7), %s479_s14, 128  }
  0xe0   : > { %855 = vsyncadd (%p641_p7), %s479_s14, 4294967168  ;;  %s24_s23 = sadd.s32 1, %s878_s23   ;;  %s1106_s15 = sld [smem:[#allocation17_spill]] }
  0xe1   : > { %p21_p10 = scmp.ge.s32.totalorder %s24_s23, 4   ;;  %s1107_s21 = sld [smem:[#allocation14_spill]] }
  0xe2   : > { %s1108_s22 = sld [smem:[#allocation16_spill]]  ;;  %s1109_s18 = smov %s862_s19 }
  0xe3   : > { %s1110_s19 = smov %s866_s20  ;;  %23 = sbr.rel (!%p21_p10) target bundleno = 10 (0xa), region = 102 }
  0xe6   : > { %s1111_s20 = smov %s1106_s15 }
  0xe8   :  { %485 = vsyncpa [#allocation3], 1 }
  0xe9   :  { %487 = vsyncpa [#allocation3 + $0x1], 1 }
  0xea   :  { %488 = vsyncpa [#allocation6], 1 }
  0xeb   :  { %490 = vsyncpa [#allocation6 + $0x1], 1 }
  0xec   :  { %491 = vsyncpa [#allocation4], 1 }
  0xed   :  { %493 = vsyncpa [#allocation4 + $0x1], 1 }

</bundles_post_ra>
